<compile_context>
chip_gen: v7x
topology: tpu7x:2x2x1
jax: 0.10.0
libtpu: 0.0.40
codegen_flags: <defaults>
</compile_context>

<pallas_src>
import jax
import jax.numpy as jnp
from jax.experimental import pallas as pl
from jax.experimental.pallas import tpu as pltpu

LN_EPS = 1e-5


def _lddt_head_kernel(
    s_ref,      # (tm, c_in)            input rows
    g_ref,      # (1, c_in)             layernorm weight
    beta_ref,   # (1, c_in)             layernorm bias
    w1_ref,     # (c_in, c_hidden)
    b1_ref,     # (1, c_hidden)
    w2_ref,     # (c_hidden, c_hidden)
    b2_ref,     # (1, c_hidden)
    w3_ref,     # (c_hidden, nbp)       output-padded to lane-dense width
    b3_ref,     # (1, nbp)
    o_ref,      # (tm, nbp)
):
    x = s_ref[...].astype(jnp.float32)
    inv_c = 1.0 / x.shape[-1]

    # --- LayerNorm over the feature (last) axis, single-pass statistics ---
    sum_x = jnp.sum(x, axis=-1, keepdims=True)
    sum_xx = jnp.sum(x * x, axis=-1, keepdims=True)
    mean = sum_x * inv_c
    var = jnp.maximum(sum_xx * inv_c - mean * mean, 0.0)  # clamp: cancellation
    xn = (x - mean) * jax.lax.rsqrt(var + LN_EPS)
    xn = xn * g_ref[...].astype(jnp.float32) + beta_ref[...].astype(jnp.float32)

    # Matmul operand dtype follows the weights (f32 default, bf16 optional);
    # accumulation is always f32 via preferred_element_type.
    mm_dtype = w1_ref.dtype

    # --- Linear 1 + ReLU ---
    h = jnp.dot(xn.astype(mm_dtype), w1_ref[...],
                preferred_element_type=jnp.float32)
    h = jnp.maximum(h + b1_ref[...].astype(jnp.float32), 0.0)

    # --- Linear 2 + ReLU ---
    h = jnp.dot(h.astype(mm_dtype), w2_ref[...],
                preferred_element_type=jnp.float32)
    h = jnp.maximum(h + b2_ref[...].astype(jnp.float32), 0.0)

    # --- Linear 3 (final, no activation) ---
    out = jnp.dot(h.astype(mm_dtype), w3_ref[...],
                  preferred_element_type=jnp.float32)
    out = out + b3_ref[...].astype(jnp.float32)

    o_ref[...] = out.astype(o_ref.dtype)


def per_residue_lddt_ca_predictor(s, params, *, tm=256, mm_dtype=None):
    """s: [batch, n_res, c_in] -> logits [batch, n_res, no_bins].

    tm: row tile (rows per grid step). 256 default; sweep 256/512/1024 on
        v6e/v7x, 128-512 on v5e. Clamped down for small batch*n_res.
    mm_dtype: optional matmul-operand dtype (e.g. jnp.bfloat16) for full-rate
        MXU; f32 accumulation is preserved.
    """
    batch, n_res, c_in = s.shape
    c_hidden = params["w1"].shape[1]
    no_bins = params["w3"].shape[1]

    # --- Row padding so arbitrary batch*n_res works with a large tile. ---
    M = batch * n_res
    m8 = max(8, -(-M // 8) * 8)          # M rounded up to the 8-sublane unit
    tm_eff = min(tm, m8)                 # don't pad tiny inputs to a huge tile
    grid_m = -(-M // tm_eff)
    Mp = grid_m * tm_eff
    s2d = s.reshape(M, c_in)
    if Mp != M:
        s2d = jnp.pad(s2d, ((0, Mp - M), (0, 0)))

    # --- Lane-dense output: pad no_bins up to a multiple of 128. ---
    nbp = max(128, -(-no_bins // 128) * 128)

    w1, w2, w3 = params["w1"], params["w2"], params["w3"]
    if mm_dtype is not None:
        w1 = w1.astype(mm_dtype)
        w2 = w2.astype(mm_dtype)
        w3 = w3.astype(mm_dtype)
    w3p = jnp.pad(w3, ((0, 0), (0, nbp - no_bins)))

    # 2-D (1, C) biases / LN params so they sit cleanly in VMEM lanes.
    g = params["ln_weight"].reshape(1, c_in)
    beta = params["ln_bias"].reshape(1, c_in)
    b1 = params["b1"].reshape(1, c_hidden)
    b2 = params["b2"].reshape(1, c_hidden)
    b3 = jnp.pad(params["b3"], (0, nbp - no_bins)).reshape(1, nbp)

    full = lambda r, c: pl.BlockSpec((r, c), lambda i: (0, 0))

    w_bytes = sum(int(w.size) * w.dtype.itemsize for w in (w1, w2, w3p))
    cost = pl.CostEstimate(
        flops=2 * Mp * (c_in * c_hidden + c_hidden * c_hidden + c_hidden * nbp),
        transcendentals=Mp,  # one rsqrt per row
        bytes_accessed=Mp * c_in * s2d.dtype.itemsize
        + Mp * nbp * s.dtype.itemsize
        + w_bytes,
    )

    out2d = pl.pallas_call(
        _lddt_head_kernel,
        out_shape=jax.ShapeDtypeStruct((Mp, nbp), s.dtype),
        grid_spec=pltpu.PrefetchScalarGridSpec(
            num_scalar_prefetch=0,
            grid=(grid_m,),
            in_specs=[
                pl.BlockSpec((tm_eff, c_in), lambda i: (i, 0)),  # s rows
                full(1, c_in),                                    # ln weight
                full(1, c_in),                                    # ln bias
                full(c_in, c_hidden),                             # w1
                full(1, c_hidden),                                # b1
                full(c_hidden, c_hidden),                         # w2
                full(1, c_hidden),                                # b2
                full(c_hidden, nbp),                              # w3 (padded)
                full(1, nbp),                                     # b3 (padded)
            ],
            out_specs=pl.BlockSpec((tm_eff, nbp), lambda i: (i, 0)),
        ),
        compiler_params=pltpu.CompilerParams(
            dimension_semantics=("parallel",),
        ),
        cost_estimate=cost,
    )(s2d, g, beta, w1, b1, w2, b2, w3p, b3)

    # Drop row padding and output-column padding.
    return out2d[:M, :no_bins].reshape(batch, n_res, no_bins)


def init_params(key, c_in, c_hidden, no_bins, dtype=jnp.float32):
    """Deterministic synthetic init (shapes match the PyTorch module).

    OpenFold's init='relu' is He-normal and init='final' is zeros; here we use
    small deterministic gaussians everywhere (incl. the final layer) so the
    forward output is non-trivial for testing.
    """
    ks = jax.random.split(key, 6)
    he = lambda k, fan_in, shape: (
        jax.random.normal(k, shape, dtype) * jnp.sqrt(2.0 / fan_in)
    )
    return {
        "ln_weight": jnp.ones((c_in,), dtype),
        "ln_bias": jnp.zeros((c_in,), dtype),
        "w1": he(ks[0], c_in, (c_in, c_hidden)),
        "b1": jnp.zeros((c_hidden,), dtype),
        "w2": he(ks[1], c_hidden, (c_hidden, c_hidden)),
        "b2": jnp.zeros((c_hidden,), dtype),
        "w3": 0.02 * jax.random.normal(ks[2], (c_hidden, no_bins), dtype),
        "b3": jnp.zeros((no_bins,), dtype),
    }


def _reference(s, p):
    x = s.astype(jnp.float32)
    mean = jnp.mean(x, axis=-1, keepdims=True)
    var = jnp.mean((x - mean) ** 2, axis=-1, keepdims=True)
    x = (x - mean) * jax.lax.rsqrt(var + LN_EPS)
    x = x * p["ln_weight"] + p["ln_bias"]
    x = jnp.maximum(x @ p["w1"] + p["b1"], 0.0)
    x = jnp.maximum(x @ p["w2"] + p["b2"], 0.0)
    return x @ p["w3"] + p["b3"]


if __name__ == "__main__":
    # Small shapes consistent with the module: batch=2, n_res=8, c_in=32,
    # c_hidden=32, no_bins=50 (AlphaFold pLDDT head bin count).
    batch, n_res, c_in, c_hidden, no_bins = 2, 8, 32, 32, 50

    key = jax.random.PRNGKey(0)
    k_s, k_p = jax.random.split(key)
    s = jax.random.normal(k_s, (batch, n_res, c_in), jnp.float32)
    params = init_params(k_p, c_in, c_hidden, no_bins)

    # M=16 rows: tm is clamped to 16 internally (no 240 rows of padding), and
    # the 50-bin output is restored from the 128-lane padded slab.
    out = per_residue_lddt_ca_predictor(s, params, tm=256)
    out = jax.block_until_ready(out)

    ref = _reference(s, params)
    assert out.shape == (batch, n_res, no_bins)
    assert jnp.allclose(out, ref, atol=1e-4, rtol=1e-4), "mismatch vs reference"

    print("KERNEL_OK")
</pallas_src>

<mosaic_0001>
module attributes {stable_mosaic.version = 11 : i64} {
  func.func @_lddt_head_kernel(%arg0: i32, %arg1: memref<16x32xf32, #tpu.memory_space<vmem>>, %arg2: memref<1x32xf32, #tpu.memory_space<vmem>>, %arg3: memref<1x32xf32, #tpu.memory_space<vmem>>, %arg4: memref<32x32xf32, #tpu.memory_space<vmem>>, %arg5: memref<1x32xf32, #tpu.memory_space<vmem>>, %arg6: memref<32x32xf32, #tpu.memory_space<vmem>>, %arg7: memref<1x32xf32, #tpu.memory_space<vmem>>, %arg8: memref<32x128xf32, #tpu.memory_space<vmem>>, %arg9: memref<1x128xf32, #tpu.memory_space<vmem>>, %arg10: memref<16x128xf32, #tpu.memory_space<vmem>>) attributes {dimension_semantics = [#tpu.dimension_semantics<parallel>], iteration_bounds = array<i64: 1>, scalar_prefetch = 0 : i64, scratch_operands = 0 : i64, tpu.core_type = #tpu.core_type<tc>, window_params = [{transform_indices = @transform_0, window_bounds = array<i64: 16, 32>}, {pipeline_mode = #tpu.pipeline_mode<synchronous>, transform_indices = @transform_1, window_bounds = array<i64: 1, 32>}, {pipeline_mode = #tpu.pipeline_mode<synchronous>, transform_indices = @transform_2, window_bounds = array<i64: 1, 32>}, {pipeline_mode = #tpu.pipeline_mode<synchronous>, transform_indices = @transform_3, window_bounds = array<i64: 32, 32>}, {pipeline_mode = #tpu.pipeline_mode<synchronous>, transform_indices = @transform_4, window_bounds = array<i64: 1, 32>}, {pipeline_mode = #tpu.pipeline_mode<synchronous>, transform_indices = @transform_5, window_bounds = array<i64: 32, 32>}, {pipeline_mode = #tpu.pipeline_mode<synchronous>, transform_indices = @transform_6, window_bounds = array<i64: 1, 32>}, {pipeline_mode = #tpu.pipeline_mode<synchronous>, transform_indices = @transform_7, window_bounds = array<i64: 32, 128>}, {pipeline_mode = #tpu.pipeline_mode<synchronous>, transform_indices = @transform_8, window_bounds = array<i64: 1, 128>}, {transform_indices = @transform_9, window_bounds = array<i64: 16, 128>}]} {
    %c0 = arith.constant 0 : index
    %c0_0 = arith.constant 0 : index
    %0 = vector.load %arg1[%c0, %c0_0] : memref<16x32xf32, #tpu.memory_space<vmem>>, vector<16x32xf32>
    %cst = arith.constant dense<0.000000e+00> : vector<16xf32>
    %1 = vector.multi_reduction <add>, %0, %cst [1] : vector<16x32xf32> to vector<16xf32>
    %2 = vector.shape_cast %1 : vector<16xf32> to vector<16x1xf32>
    %3 = arith.mulf %0, %0 : vector<16x32xf32>
    %cst_1 = arith.constant dense<0.000000e+00> : vector<16xf32>
    %4 = vector.multi_reduction <add>, %3, %cst_1 [1] : vector<16x32xf32> to vector<16xf32>
    %5 = vector.shape_cast %4 : vector<16xf32> to vector<16x1xf32>
    %cst_2 = arith.constant 3.125000e-02 : f32
    %6 = vector.broadcast %cst_2 : f32 to vector<16x1xf32>
    %7 = arith.mulf %2, %6 : vector<16x1xf32>
    %cst_3 = arith.constant 3.125000e-02 : f32
    %8 = vector.broadcast %cst_3 : f32 to vector<16x1xf32>
    %9 = arith.mulf %5, %8 : vector<16x1xf32>
    %10 = arith.mulf %7, %7 : vector<16x1xf32>
    %11 = arith.subf %9, %10 : vector<16x1xf32>
    %cst_4 = arith.constant 0.000000e+00 : f32
    %12 = vector.broadcast %cst_4 : f32 to vector<16x1xf32>
    %13 = arith.maximumf %11, %12 : vector<16x1xf32>
    %14 = vector.broadcast %7 : vector<16x1xf32> to vector<16x32xf32>
    %15 = arith.subf %0, %14 : vector<16x32xf32>
    %cst_5 = arith.constant 9.99999974E-6 : f32
    %16 = vector.broadcast %cst_5 : f32 to vector<16x1xf32>
    %17 = arith.addf %13, %16 : vector<16x1xf32>
    %18 = math.rsqrt %17 : vector<16x1xf32>
    %19 = vector.broadcast %18 : vector<16x1xf32> to vector<16x32xf32>
    %20 = arith.mulf %15, %19 : vector<16x32xf32>
    %c0_6 = arith.constant 0 : index
    %c0_7 = arith.constant 0 : index
    %21 = vector.load %arg2[%c0_6, %c0_7] : memref<1x32xf32, #tpu.memory_space<vmem>>, vector<1x32xf32>
    %22 = vector.broadcast %21 : vector<1x32xf32> to vector<16x32xf32>
    %23 = arith.mulf %20, %22 : vector<16x32xf32>
    %c0_8 = arith.constant 0 : index
    %c0_9 = arith.constant 0 : index
    %24 = vector.load %arg3[%c0_8, %c0_9] : memref<1x32xf32, #tpu.memory_space<vmem>>, vector<1x32xf32>
    %25 = vector.broadcast %24 : vector<1x32xf32> to vector<16x32xf32>
    %26 = arith.addf %23, %25 : vector<16x32xf32>
    %c0_10 = arith.constant 0 : index
    %c0_11 = arith.constant 0 : index
    %27 = vector.load %arg4[%c0_10, %c0_11] : memref<32x32xf32, #tpu.memory_space<vmem>>, vector<32x32xf32>
    %cst_12 = arith.constant dense<0.000000e+00> : vector<16x32xf32>
    %28 = tpu.matmul %26, %27, %cst_12 {dimension_numbers = #tpu.dot_dimension_numbers<[1], [0], [0], [1], [0, 0, 1, 1], [], []>} : vector<16x32xf32>, vector<32x32xf32>, vector<16x32xf32> -> vector<16x32xf32>
    %c0_13 = arith.constant 0 : index
    %c0_14 = arith.constant 0 : index
    %29 = vector.load %arg5[%c0_13, %c0_14] : memref<1x32xf32, #tpu.memory_space<vmem>>, vector<1x32xf32>
    %30 = vector.broadcast %29 : vector<1x32xf32> to vector<16x32xf32>
    %31 = arith.addf %28, %30 : vector<16x32xf32>
    %cst_15 = arith.constant 0.000000e+00 : f32
    %32 = vector.broadcast %cst_15 : f32 to vector<16x32xf32>
    %33 = arith.maximumf %31, %32 : vector<16x32xf32>
    %c0_16 = arith.constant 0 : index
    %c0_17 = arith.constant 0 : index
    %34 = vector.load %arg6[%c0_16, %c0_17] : memref<32x32xf32, #tpu.memory_space<vmem>>, vector<32x32xf32>
    %cst_18 = arith.constant dense<0.000000e+00> : vector<16x32xf32>
    %35 = tpu.matmul %33, %34, %cst_18 {dimension_numbers = #tpu.dot_dimension_numbers<[1], [0], [0], [1], [0, 0, 1, 1], [], []>} : vector<16x32xf32>, vector<32x32xf32>, vector<16x32xf32> -> vector<16x32xf32>
    %c0_19 = arith.constant 0 : index
    %c0_20 = arith.constant 0 : index
    %36 = vector.load %arg7[%c0_19, %c0_20] : memref<1x32xf32, #tpu.memory_space<vmem>>, vector<1x32xf32>
    %37 = vector.broadcast %36 : vector<1x32xf32> to vector<16x32xf32>
    %38 = arith.addf %35, %37 : vector<16x32xf32>
    %cst_21 = arith.constant 0.000000e+00 : f32
    %39 = vector.broadcast %cst_21 : f32 to vector<16x32xf32>
    %40 = arith.maximumf %38, %39 : vector<16x32xf32>
    %c0_22 = arith.constant 0 : index
    %c0_23 = arith.constant 0 : index
    %41 = vector.load %arg8[%c0_22, %c0_23] : memref<32x128xf32, #tpu.memory_space<vmem>>, vector<32x128xf32>
    %cst_24 = arith.constant dense<0.000000e+00> : vector<16x128xf32>
    %42 = tpu.matmul %40, %41, %cst_24 {dimension_numbers = #tpu.dot_dimension_numbers<[1], [0], [0], [1], [0, 0, 1, 1], [], []>} : vector<16x32xf32>, vector<32x128xf32>, vector<16x128xf32> -> vector<16x128xf32>
    %c0_25 = arith.constant 0 : index
    %c0_26 = arith.constant 0 : index
    %43 = vector.load %arg9[%c0_25, %c0_26] : memref<1x128xf32, #tpu.memory_space<vmem>>, vector<1x128xf32>
    %44 = vector.broadcast %43 : vector<1x128xf32> to vector<16x128xf32>
    %45 = arith.addf %42, %44 : vector<16x128xf32>
    %c0_27 = arith.constant 0 : index
    %c0_28 = arith.constant 0 : index
    %46 = vector.load %arg10[%c0_27, %c0_28] : memref<16x128xf32, #tpu.memory_space<vmem>>, vector<16x128xf32>
    tpu.vector_store %arg10[%c0_27, %c0_28], %45 {strides = array<i32>} : memref<16x128xf32, #tpu.memory_space<vmem>>, vector<16x128xf32>,
    return
  }
  func.func @transform_0(%arg0: i32) -> (i32, i32) {
    %c0_i32 = arith.constant 0 : i32
    %c0_i32_0 = arith.constant 0 : i32
    return %arg0, %c0_i32 : i32, i32
  }
  func.func @transform_1(%arg0: i32) -> (i32, i32) {
    %c0_i32 = arith.constant 0 : i32
    %c0_i32_0 = arith.constant 0 : i32
    %c0_i32_1 = arith.constant 0 : i32
    return %c0_i32, %c0_i32_0 : i32, i32
  }
  func.func @transform_2(%arg0: i32) -> (i32, i32) {
    %c0_i32 = arith.constant 0 : i32
    %c0_i32_0 = arith.constant 0 : i32
    %c0_i32_1 = arith.constant 0 : i32
    return %c0_i32, %c0_i32_0 : i32, i32
  }
  func.func @transform_3(%arg0: i32) -> (i32, i32) {
    %c0_i32 = arith.constant 0 : i32
    %c0_i32_0 = arith.constant 0 : i32
    %c0_i32_1 = arith.constant 0 : i32
    return %c0_i32, %c0_i32_0 : i32, i32
  }
  func.func @transform_4(%arg0: i32) -> (i32, i32) {
    %c0_i32 = arith.constant 0 : i32
    %c0_i32_0 = arith.constant 0 : i32
    %c0_i32_1 = arith.constant 0 : i32
    return %c0_i32, %c0_i32_0 : i32, i32
  }
  func.func @transform_5(%arg0: i32) -> (i32, i32) {
    %c0_i32 = arith.constant 0 : i32
    %c0_i32_0 = arith.constant 0 : i32
    %c0_i32_1 = arith.constant 0 : i32
    return %c0_i32, %c0_i32_0 : i32, i32
  }
  func.func @transform_6(%arg0: i32) -> (i32, i32) {
    %c0_i32 = arith.constant 0 : i32
    %c0_i32_0 = arith.constant 0 : i32
    %c0_i32_1 = arith.constant 0 : i32
    return %c0_i32, %c0_i32_0 : i32, i32
  }
  func.func @transform_7(%arg0: i32) -> (i32, i32) {
    %c0_i32 = arith.constant 0 : i32
    %c0_i32_0 = arith.constant 0 : i32
    %c0_i32_1 = arith.constant 0 : i32
    return %c0_i32, %c0_i32_0 : i32, i32
  }
  func.func @transform_8(%arg0: i32) -> (i32, i32) {
    %c0_i32 = arith.constant 0 : i32
    %c0_i32_0 = arith.constant 0 : i32
    %c0_i32_1 = arith.constant 0 : i32
    return %c0_i32, %c0_i32_0 : i32, i32
  }
  func.func @transform_9(%arg0: i32) -> (i32, i32) {
    %c0_i32 = arith.constant 0 : i32
    %c0_i32_0 = arith.constant 0 : i32
    return %arg0, %c0_i32 : i32, i32
  }
}

</mosaic_0001>

<bundles_post_ra>
// kernel: tpu_custom_call.1
= control target key start
LH: loop header
LB: loop body
LE: loop exit
PB: predicated region body
PF: predicated region fallthrough
CT: control target
= control target key end

     0   :  { %14 = vsyncpa [#allocation3], 0  ;;  %s828_s0 = inlined_call_operand.hbm [shape: f32[16,32], index: 0, kind: input, shape index: {}]   ;;  %s829_s1 = inlined_call_operand.vmem [shape: f32[1,32], index: 1, kind: input, shape index: {}]   ;;  %s830_s2 = inlined_call_operand.vmem [shape: f32[1,32], index: 2, kind: input, shape index: {}]   ;;  %s831_s3 = inlined_call_operand.hbm [shape: f32[32,32], index: 3, kind: input, shape index: {}]   ;;  %s832_s4 = inlined_call_operand.vmem [shape: f32[1,32], index: 4, kind: input, shape index: {}]   ;;  %s833_s5 = inlined_call_operand.hbm [shape: f32[32,32], index: 5, kind: input, shape index: {}]   ;;  %s834_s6 = inlined_call_operand.vmem [shape: f32[1,32], index: 6, kind: input, shape index: {}]   ;;  %s835_s7 = inlined_call_operand.hbm [shape: f32[32,128], index: 7, kind: input, shape index: {}]   ;;  %s836_s8 = inlined_call_operand.vmem [shape: f32[1,128], index: 8, kind: input, shape index: {}]   ;;  %s837_s9 = inlined_call_operand.hbm [shape: f32[16,128], index: 9, kind: output, shape index: {}]  }
   0x1   :  { %15 = vsyncpa [#allocation6], 0 }
   0x2   :  { %16 = vsyncpa [#allocation9], 0 }
   0x3   :  { %17 = vsyncpa [#allocation4], 0  ;;  %s657_s30 = smov [#allocation5]   ;;  %s658_s11 = smov [#allocation2]  }
   0x4   :  { %s39_s10 = sshll.u32 %s657_s30, 4  ;;  %s23_s12 = sshll.u32 %s658_s11, 4  ;;  %s40_s10 = int_to_ptr.vmem [resolvable:$true] %s39_s10  ;;  %s714_s12 = int_to_ptr.vmem [resolvable:$true] %s23_s12 }
   0x5   :  { %s539_s15 = scalar_lea.hbm %s831_s3, 512 }
   0x6   :  { %p540_p0 = scmp.ne.s32.totalorder %s831_s3, %s539_s15  ;;  %p543_p1 = scmp.lt.u32.totalorder %s539_s15, %s831_s3 }
   0x8   :  { %p545_p2 = pnand %p543_p1, %p540_p0 }
   0xa   :  { %548 = shalt.err (!%p545_p2)
}
   0xb   :  { %s549_s20 = scalar_lea.vmem %s40_s10, 512  ;;  %p554_p4 = scmp.lt.s32.totalorder %s40_s10, %s40_s10 }
   0xc   :  { %p550_p3 = scmp.ne.s32.totalorder %s40_s10, %s549_s20  ;;  %p555_p5 = scmp.lt.s32.totalorder %s549_s20, %s549_s20 }
   0xe   :  { %p556_p6 = por %p555_p5, %p554_p4 }
  0x10   :  { %p557_p7 = pnand %p556_p6, %p550_p3 }
  0x12   :  { %560 = shalt.err (!%p557_p7)
}
  0x13   :  { %s659_s21 = smov 128   ;;  %s660_s22 = smov 8  }
  0x14   :  { %45 = dma.hbm_to_vmem [thread:$0]  %s831_s3, 512, %s40_s10, [#allocation6], %s659_s21, %s659_s21, %s660_s22  }
  0x15   :  { %s561_s27 = scalar_lea.hbm %s828_s0, 256 }
  0x16   :  { %p562_p8 = scmp.ne.s32.totalorder %s828_s0, %s561_s27  ;;  %p565_p9 = scmp.lt.u32.totalorder %s561_s27, %s828_s0 }
  0x18   :  { %p567_p10 = pnand %p565_p9, %p562_p8 }
  0x1a   :  { %570 = shalt.err (!%p567_p10)
}
  0x1b   :  { %s571_s13 = scalar_lea.vmem %s714_s12, 256  ;;  %p576_p12 = scmp.lt.s32.totalorder %s714_s12, %s714_s12 }
  0x1c   :  { %p572_p11 = scmp.ne.s32.totalorder %s714_s12, %s571_s13  ;;  %p577_p13 = scmp.lt.s32.totalorder %s571_s13, %s571_s13 }
  0x1e   :  { %p578_p0 = por %p577_p13, %p576_p12 }
  0x20   :  { %p579_p1 = pnand %p578_p0, %p572_p11 }
  0x22   :  { %582 = shalt.err (!%p579_p1)
}
  0x23   :  { %29 = dma.hbm_to_vmem [thread:$0]  %s828_s0, 256, %s714_s12, [#allocation3], %s659_s21, %s659_s21, %s660_s22  }
  0x24   :  { %s661_s14 = smov [#allocation7]   ;;  %s662_s16 = smov [#allocation8]  }
  0x25   :  { %s53_s15 = sshll.u32 %s661_s14, 4  ;;  %s67_s17 = sshll.u32 %s662_s16, 4  ;;  %s54_s15 = int_to_ptr.vmem [resolvable:$true] %s53_s15  ;;  %s751_s17 = int_to_ptr.vmem [resolvable:$true] %s67_s17 }
  0x26   :  { %s583_s20 = scalar_lea.hbm %s833_s5, 512 }
  0x27   :  { %p584_p2 = scmp.ne.s32.totalorder %s833_s5, %s583_s20  ;;  %p587_p3 = scmp.lt.u32.totalorder %s583_s20, %s833_s5 }
  0x29   :  { %p589_p4 = pnand %p587_p3, %p584_p2 }
  0x2b   :  { %592 = shalt.err (!%p589_p4)
}
  0x2c   :  { %s593_s0 = scalar_lea.vmem %s54_s15, 512  ;;  %p598_p6 = scmp.lt.s32.totalorder %s54_s15, %s54_s15 }
  0x2d   :  { %p594_p5 = scmp.ne.s32.totalorder %s54_s15, %s593_s0  ;;  %p599_p7 = scmp.lt.s32.totalorder %s593_s0, %s593_s0 }
  0x2f   :  { %p600_p8 = por %p599_p7, %p598_p6 }
  0x31   :  { %p601_p9 = pnand %p600_p8, %p594_p5 }
  0x33   :  { %604 = shalt.err (!%p601_p9)
}
  0x34   :  { %59 = dma.hbm_to_vmem [thread:$0]  %s833_s5, 512, %s54_s15, [#allocation6], %s659_s21, %s659_s21, %s660_s22  }
  0x35   :  { %s605_s30 = scalar_lea.hbm %s835_s7, 512 }
  0x36   :  { %p606_p10 = scmp.ne.s32.totalorder %s835_s7, %s605_s30  ;;  %p609_p11 = scmp.lt.u32.totalorder %s605_s30, %s835_s7 }
  0x38   :  { %p611_p12 = pnand %p609_p11, %p606_p10 }
  0x3a   :  { %614 = shalt.err (!%p611_p12)
}
  0x3b   :  { %s615_s14 = scalar_lea.vmem %s751_s17, 512  ;;  %p620_p0 = scmp.lt.s32.totalorder %s751_s17, %s751_s17 }
  0x3c   :  { %p616_p13 = scmp.ne.s32.totalorder %s751_s17, %s615_s14  ;;  %p621_p1 = scmp.lt.s32.totalorder %s615_s14, %s615_s14 }
  0x3e   :  { %p622_p2 = por %p621_p1, %p620_p0 }
  0x40   :  { %p623_p3 = pnand %p622_p2, %p616_p13 }
  0x42   :  { %626 = shalt.err (!%p623_p3)
}
  0x43   :  { %73 = dma.hbm_to_vmem [thread:$0]  %s835_s7, 512, %s751_s17, [#allocation9], %s659_s21, %s659_s21, %s660_s22  }
  0x44   :  { %649 = dma.done.wait [#allocation3], 256  }
  0x45   :  { %650 = vsyncadd [#allocation3], 4294967040 }
  0x46   :  { %651 = dma.done.wait [#allocation6], 1024  }
  0x47   :  { %652 = vsyncadd [#allocation6], 4294966272 }
  0x48   :  { %653 = dma.done.wait [#allocation9], 512  }
  0x49   :  { %654 = vsyncadd [#allocation9], 4294966784  ;;  %vm90_vm0 = vcmask 261120   ;;  %v88_v0 = vld [vmem:[#allocation2] sm:$0xff]  ;;  %v89_v1 = vld [vmem:[#allocation2 + $0x8] sm:$0xff]  ;;  %s663_s24 = smov [#allocation10]  }
  0x4a   :  { %v91_v2 = vsel %vm90_vm0, %v88_v0, 0.0  ;;  %v97_v3 = vmul.f32 %v88_v0, %v88_v0  ;;  %v98_v4 = vmul.f32 %v89_v1, %v89_v1  ;;  %v94_v6 = vsel %vm90_vm0, %v89_v1, 0.0  ;;  %v141_v8 = vld [vmem:[#allocation5] sm:$0xff]  ;;  %v142_v9 = vld [vmem:[#allocation5 + $0x8] sm:$0xff]  ;;  %v143_v10 = vld [vmem:[#allocation5 + $0x10] sm:$0xff]  ;;  %s428_s25 = sshll.u32 %s663_s24, 4  ;;  %s429_s25 = int_to_ptr.vmem [resolvable:$true] %s428_s25 }
  0x4b   :  { %92 = vadd.xlane.f32.xlu0 %v91_v2  ;;  %v504_v11 = vpack.c.bf16 %v142_v9, %v141_v8  ;;  %v144_v12 = vld [vmem:[#allocation5 + $0x18] sm:$0xff]  ;;  %v235_v14 = vld [vmem:[#allocation7] sm:$0xff]  ;;  %v236_v15 = vld [vmem:[#allocation7 + $0x8] sm:$0xff]  ;;  %p632_p5 = scmp.lt.s32.totalorder %s429_s25, %s429_s25 }
  0x4c   :  { %v99_v5 = vsel %vm90_vm0, %v97_v3, 0.0  ;;  %v102_v7 = vsel %vm90_vm0, %v98_v4, 0.0  ;;  %v508_v13 = vpack.c.bf16 %v144_v12, %v143_v10  ;;  %v512_v16 = vpack.c.bf16 %v236_v15, %v235_v14  ;;  %v442_v35 = vld [vmem:[%s829_s1] ss:$0 sm:$0xff]  ;;  %v238_v46 = vld [vmem:[#allocation7 + $0x18] sm:$0xff]  ;;  %v329_v48 = vld [vmem:[#allocation8] sm:$0xff] }
  0x4d   :  { %100 = vadd.xlane.f32.xlu1 %v99_v5  ;;  %505 = vmatprep.subr.bf16.mxu0 %v504_v11  ;;  %v443_v37 = vld [vmem:[%s830_s2] ss:$0 sm:$0xff]  ;;  %v330_v49 = vld [vmem:[#allocation8 + $0x8] sm:$0xff]  ;;  %v332_v59 = vld [vmem:[#allocation8 + $0x18] sm:$0xff] }
  0x4e   :  { %507 = vmatpush3.bf16.msra.mxu0 %v504_v11  ;;  %513 = vmatprep.subr.bf16.mxu1 %v512_v16  ;;  %v237_v45 = vld [vmem:[#allocation7 + $0x10] sm:$0xff]  ;;  %v520_v50 = vpack.c.bf16 %v330_v49, %v329_v48 }
  0x4f   :  { %95 = vadd.xlane.f32.xlu0 %v94_v6  ;;  %509 = vmatprep.subr.bf16.mxu0 %v508_v13  ;;  %v516_v47 = vpack.c.bf16 %v238_v46, %v237_v45  ;;  %v444_v51 = vld [vmem:[%s832_s4] ss:$0 sm:$0xff] }
  0x50   :  { %515 = vmatpush3.bf16.msra.mxu1 %v512_v16  ;;  %v331_v58 = vld [vmem:[#allocation8 + $0x10] sm:$0xff] }
  0x51   :  { %103 = vadd.xlane.f32.xlu1 %v102_v7  ;;  %517 = vmatprep.subr.bf16.mxu1 %v516_v47  ;;  %v524_v60 = vpack.c.bf16 %v332_v59, %v331_v58  ;;  %v447_v61 = vld [vmem:[%s834_s6] ss:$0 sm:$0xff]  ;;  %s627_s6 = scalar_lea.vmem %s429_s25, 256 }
  0x52   :  { %511 = vmatpush3.bf16.msra.mxu0 %v508_v13  ;;  %v450_v4 = vld [vmem:[%s836_s8] ss:$0 sm:$0xff]  ;;  %p628_p4 = scmp.ne.s32.totalorder %s429_s25, %s627_s6  ;;  %p633_p6 = scmp.lt.s32.totalorder %s627_s6, %s627_s6 }
  0x53   :  { %521 = vmatprep.subr.bf16.mxu0 %v520_v50 }
  0x54   :  { %519 = vmatpush3.bf16.msra.mxu1 %v516_v47  ;;  %p634_p7 = por %p633_p6, %p632_p5 }
  0x56   :  { %p635_p8 = pnand %p634_p7, %p628_p4 }
  0xd8   :  { %v93_v17 = vpop.xlane.xlu0 %92 }
  0xd9   :  { %v105_v18 = vmul.f32 0.03125, %v93_v17 }
  0xda   :  { %v101_v19 = vpop.xlane.xlu1 %100 }
  0xdb   :  { %v109_v20 = vmul.f32 %v105_v18, %v105_v18  ;;  %v107_v21 = vmul.f32 0.03125, %v101_v19  ;;  %v115_v33 = vsub.f32 %v88_v0, %v105_v18 }
  0xdc   :  { %v96_v22 = vpop.xlane.xlu0 %95 }
  0xdd   :  { %v111_v23 = vsub.f32 %v107_v21, %v109_v20  ;;  %v106_v24 = vmul.f32 0.03125, %v96_v22 }
  0xde   :  { %v104_v25 = vpop.xlane.xlu1 %103 }
  0xdf   :  { %v113_v26 = vmax.f32 %v111_v23, 0.0  ;;  %v110_v27 = vmul.f32 %v106_v24, %v106_v24  ;;  %v108_v28 = vmul.f32 0.03125, %v104_v25  ;;  %v116_v38 = vsub.f32 %v89_v1, %v106_v24 }
  0xe1   :  { %v117_v29 = vadd.f32 1e-05, %v113_v26  ;;  %v112_v30 = vsub.f32 %v108_v28, %v110_v27 }
  0xe3   :  { %535 = vrsqrt.f32 %v117_v29  ;;  %v114_v31 = vmax.f32 %v112_v30, 0.0 }
  0xe5   :  { %v118_v32 = vadd.f32 1e-05, %v114_v31 }
  0xe7   :  { %537 = vrsqrt.f32 %v118_v32 }
  0xed   :  { %v536_v34 = vpop.eup %535 }
  0xee   :  { %v121_v36 = vmul.f32 %v536_v34, %v115_v33 }
  0xf0   :  { %v130_v39 = vmul.f32 %v442_v35, %v121_v36 }
  0xf1   :  { %v538_v40 = vpop.eup %537 }
  0xf2   :  { %v122_v41 = vmul.f32 %v538_v40, %v116_v38  ;;  %v139_v42 = vadd.f32 %v443_v37, %v130_v39 }
  0xf4   :  { %v131_v43 = vmul.f32 %v442_v35, %v122_v41  ;;  %479 = vmatprep.mubr.msk.f32.mxu0 %vm90_vm0, %v139_v42 }
  0xf6   :  { %v140_v44 = vadd.f32 %v443_v37, %v131_v43 }
  0xf8   :  { %480 = vmatmul.mubr.msk.f32.vlgmr.msra.gmra.mrb[0].mxu0 %vm90_vm0, %v140_v44 }
  0xf9   :  { %523 = vmatpush3.bf16.msra.mxu0 %v520_v50 }
  0xfa   :  { %525 = vmatprep.subr.bf16.mxu0 %v524_v60 }
  0xfd   :  { %527 = vmatpush3.bf16.msra.mxu0 %v524_v60 }
 0x1cb   :  { %v481_v52 = vpop.f32.mrb[0].mxu0 }
 0x1cc   :  { %v230_v53 = vadd.f32 %v481_v52, %v444_v51  ;;  %v224_v54 = vpop.f32.mrb[1].mxu0 }
 0x1cd   :  { %v225_v55 = vadd.f32 %v444_v51, %v224_v54 }
 0x1ce   :  { %v234_v57 = vmax.f32 %v230_v53, 0.0 }
 0x1cf   :  { %v233_v56 = vmax.f32 %v225_v55, 0.0 }
 0x1d1   :  { %490 = vmatprep.mubr.msk.f32.mxu1 %vm90_vm0, %v233_v56 }
 0x1d2   :  { %491 = vmatmul.mubr.msk.f32.vlgmr.msra.gmra.mrb[0].mxu1 %vm90_vm0, %v234_v57 }
 0x2a5   :  { %v492_v62 = vpop.f32.mrb[0].mxu1 }
 0x2a6   :  { %v324_v63 = vadd.f32 %v492_v62, %v447_v61  ;;  %v318_v0 = vpop.f32.mrb[1].mxu1 }
 0x2a7   :  { %v319_v1 = vadd.f32 %v447_v61, %v318_v0 }
 0x2a8   :  { %v328_v3 = vmax.f32 %v324_v63, 0.0 }
 0x2a9   :  { %v327_v2 = vmax.f32 %v319_v1, 0.0 }
 0x2ab   :  { %501 = vmatprep.mubr.msk.f32.mxu0 %vm90_vm0, %v327_v2 }
 0x2ac   :  { %502 = vmatmul.mubr.msk.f32.vlgmr.msra.gmra.mrb[2].mxu0 %vm90_vm0, %v328_v3 }
 0x37f   :  { %v503_v5 = vpop.f32.mrb[2].mxu0 }
 0x380   :  { %v418_v6 = vadd.f32 %v503_v5, %v450_v4  ;;  %v412_v7 = vpop.f32.mrb[3].mxu0 }
 0x381   :  { %v413_v8 = vadd.f32 %v450_v4, %v412_v7 }
 0x382   :  { %422 = vst [vmem:[#allocation10 + $0x8] sm:$0xff] %v418_v6 }
 0x383   :  { %421 = vst [vmem:[#allocation10] sm:$0xff] %v413_v8 }
 0x384   :  { %638 = shalt.err (!%p635_p8)
}
 0x385   :  { %s639_s8 = scalar_lea.hbm %s837_s9, 256 }
 0x386   :  { %p640_p9 = scmp.ne.s32.totalorder %s837_s9, %s639_s8  ;;  %p643_p10 = scmp.lt.u32.totalorder %s639_s8, %s837_s9 }
 0x388   :  { %p645_p11 = pnand %p643_p10, %p640_p9 }
 0x38a   :  { %648 = shalt.err (!%p645_p11)
}
 0x38b   :  { %434 = dma.vmem_to_hbm [thread:$0]  %s429_s25, 256, %s837_s9, [#allocation4], %s659_s21, %s659_s21, %s660_s22  }
 0x38c   :  { %655 = dma.done.wait [#allocation4], 256  }
 0x38d   :  { %656 = vsyncadd [#allocation4], 4294967040 }
 0x38e   :  { %438 = vsyncpa [#allocation3], 1 }
 0x38f   :  { %439 = vsyncpa [#allocation6], 1 }
 0x390   :  { %440 = vsyncpa [#allocation9], 1 }
 0x391   :  { %441 = vsyncpa [#allocation4], 1 }

</bundles_post_ra>
